<compile_context>
chip_gen: v7x
topology: tpu7x:2x2x1
jax: 0.10.0
libtpu: 0.0.40
codegen_flags: <defaults>
</compile_context>

<pallas_src>
import functools

import jax
import jax.numpy as jnp
from jax.experimental import pallas as pl
from jax.experimental.pallas import tpu as pltpu


def _round_up(x, m):
    return (x + m - 1) // m * m


# ---------------------------------------------------------------------------
# Pallas kernels
# ---------------------------------------------------------------------------
def _unpool_kernel(pooled_ref, idx_ref, out_ref, *, oh, out_w, tile_rows):
    # pooled_ref: [TR, ow, C] f32   (rows are (n, oh) flattened)
    # idx_ref:    [TR, ow, C] int32 flat index h*out_w + w in the output plane
    # out_ref:    [TR, 2, ow, 2*C] f32  -> reshapes to NHWC without transpose
    base = pl.program_id(0) * tile_rows
    vals = pooled_ref[...]
    idx = idx_ref[...]
    shp = vals.shape                                        # (TR, ow, C)
    r = jax.lax.broadcasted_iota(jnp.int32, shp, 0)
    jw = jax.lax.broadcasted_iota(jnp.int32, shp, 1)
    oh_local = (base + r) % oh
    for i in range(2):
        tgt0 = (2 * oh_local + i) * out_w + 2 * jw          # tap (i, j=0)
        row = jnp.concatenate(
            [jnp.where(idx == tgt0, vals, 0.0),             # j = 0
             jnp.where(idx == tgt0 + 1, vals, 0.0)],        # j = 1
            axis=-1)                                        # (TR, ow, 2C)
        out_ref[:, i, :, :] = row


def _gemm_bias_relu_kernel(x_ref, w_ref, b_ref, o_ref):
    # x: [TILE_M, Kp] bf16, w: [Kp, Cp] bf16, b: [1, Cp] f32 -> o: [TILE_M, Cp] f32
    acc = jnp.dot(x_ref[...], w_ref[...], preferred_element_type=jnp.float32)
    o_ref[...] = jnp.maximum(acc + b_ref[...], 0.0).astype(o_ref.dtype)


# ---------------------------------------------------------------------------
# Pallas wrappers
# ---------------------------------------------------------------------------
def maxunpool2x2(pooled_nchw, idx_nchw, H, W):
    """MaxUnpool2d(2,2): returns the unpooled activation as NHWC f32."""
    n, c, oh, ow = pooled_nchw.shape
    pooled = jnp.transpose(pooled_nchw.astype(jnp.float32), (0, 2, 3, 1))
    pooled = pooled.reshape(n * oh, ow, c)
    idx = jnp.transpose(idx_nchw.astype(jnp.int32), (0, 2, 3, 1))
    idx = idx.reshape(n * oh, ow, c)

    rows = n * oh
    tile_r = min(rows, 256)
    rows_pad = _round_up(rows, tile_r)
    if rows_pad != rows:
        pooled = jnp.pad(pooled, ((0, rows_pad - rows), (0, 0), (0, 0)))
        idx = jnp.pad(idx, ((0, rows_pad - rows), (0, 0), (0, 0)),
                      constant_values=-1)

    kernel = functools.partial(_unpool_kernel, oh=oh, out_w=W, tile_rows=tile_r)
    out = pl.pallas_call(
        kernel,
        out_shape=jax.ShapeDtypeStruct((rows_pad, 2, ow, 2 * c), jnp.float32),
        grid=(rows_pad // tile_r,),
        in_specs=[pl.BlockSpec((tile_r, ow, c), lambda r: (r, 0, 0)),
                  pl.BlockSpec((tile_r, ow, c), lambda r: (r, 0, 0))],
        out_specs=pl.BlockSpec((tile_r, 2, ow, 2 * c), lambda r: (r, 0, 0, 0)),
        compiler_params=pltpu.CompilerParams(
            dimension_semantics=("parallel",)),
    )(pooled, idx)

    up = out[:rows].reshape(n, oh, 2, ow, 2, c).reshape(n, 2 * oh, 2 * ow, c)
    if (2 * oh, 2 * ow) != (H, W):   # odd output sizes: trailing rows/cols are 0
        up = jnp.pad(up, ((0, 0), (0, H - 2 * oh), (0, W - 2 * ow), (0, 0)))
    return up


def _im2col_3x3(x_nhwc):
    n, h, w, c = x_nhwc.shape
    xp = jnp.pad(x_nhwc, ((0, 0), (1, 1), (1, 1), (0, 0)))
    cols = [xp[:, dh:dh + h, dw:dw + w, :] for dh in range(3) for dw in range(3)]
    return jnp.concatenate(cols, axis=-1).reshape(n * h * w, 9 * c)


def conv3x3_bn_relu(x_nhwc, w2d, b_row, *, tile_m=512):
    """3x3 conv (pad 1) + folded BN + ReLU via a tiled im2col GEMM."""
    n, h, w, _ = x_nhwc.shape
    k, cout = w2d.shape

    patches = _im2col_3x3(x_nhwc)                       # [M, K] f32
    m = patches.shape[0]
    k_pad = _round_up(k, 128)
    cout_pad = _round_up(cout, 128)
    tile_m = min(tile_m, _round_up(m, 8))
    m_pad = _round_up(m, tile_m)

    patches = jnp.pad(patches, ((0, m_pad - m), (0, k_pad - k))).astype(jnp.bfloat16)
    w_p = jnp.pad(w2d, ((0, k_pad - k), (0, cout_pad - cout))).astype(jnp.bfloat16)
    b_p = jnp.pad(b_row, ((0, 0), (0, cout_pad - cout))).astype(jnp.float32)

    cost = pl.CostEstimate(
        flops=2 * m_pad * k_pad * cout_pad,
        transcendentals=0,
        bytes_accessed=(m_pad * k_pad * 2 + k_pad * cout_pad * 2
                        + cout_pad * 4 + m_pad * cout_pad * 4))

    out = pl.pallas_call(
        _gemm_bias_relu_kernel,
        out_shape=jax.ShapeDtypeStruct((m_pad, cout_pad), jnp.float32),
        grid=(m_pad // tile_m,),
        in_specs=[
            pl.BlockSpec((tile_m, k_pad), lambda i: (i, 0)),
            pl.BlockSpec((k_pad, cout_pad), lambda i: (0, 0)),
            pl.BlockSpec((1, cout_pad), lambda i: (0, 0)),
        ],
        out_specs=pl.BlockSpec((tile_m, cout_pad), lambda i: (i, 0)),
        compiler_params=pltpu.CompilerParams(
            dimension_semantics=("parallel",),
            vmem_limit_bytes=64 * 1024 * 1024),
        cost_estimate=cost,
    )(patches, w_p, b_p)

    return out[:m, :cout].reshape(n, h, w, cout)


# ---------------------------------------------------------------------------
# Params, BN folding, forward
# ---------------------------------------------------------------------------
def init_params(key, in_size, out_size):
    def conv_bn(k, cin, cout):
        ks = jax.random.split(k, 6)
        bound = 1.0 / jnp.sqrt(jnp.float32(cin * 9))
        return dict(
            w=jax.random.uniform(ks[0], (cout, cin, 3, 3), jnp.float32, -bound, bound),
            b=jax.random.uniform(ks[1], (cout,), jnp.float32, -bound, bound),
            gamma=jax.random.uniform(ks[2], (cout,), jnp.float32, 0.5, 1.5),
            beta=0.1 * jax.random.normal(ks[3], (cout,), jnp.float32),
            mean=0.1 * jax.random.normal(ks[4], (cout,), jnp.float32),
            var=jax.random.uniform(ks[5], (cout,), jnp.float32, 0.5, 1.5),
        )

    k1, k2 = jax.random.split(key)
    return dict(conv1=conv_bn(k1, in_size, in_size),
                conv2=conv_bn(k2, in_size, out_size))


def _fold_bn(p, eps=1e-5):
    cout = p["w"].shape[0]
    scale = p["gamma"] / jnp.sqrt(p["var"] + eps)
    w_gemm = jnp.transpose(p["w"], (2, 3, 1, 0)).reshape(-1, cout) * scale[None, :]
    b_gemm = ((p["b"] - p["mean"]) * scale + p["beta"])[None, :]
    return w_gemm.astype(jnp.float32), b_gemm.astype(jnp.float32)


def segnet_up2_forward(inputs_nchw, indices_nchw, output_shape, params):
    n, cin, H, W = output_shape
    unpooled = maxunpool2x2(inputs_nchw, indices_nchw, H, W)      # NHWC

    w1, b1 = _fold_bn(params["conv1"])
    w2, b2 = _fold_bn(params["conv2"])

    h1 = conv3x3_bn_relu(unpooled, w1, b1)                        # [N,H,W,Cin]
    h2 = conv3x3_bn_relu(h1, w2, b2)                              # [N,H,W,Cout]
    return jnp.transpose(h2, (0, 3, 1, 2))                        # NCHW


# ---------------------------------------------------------------------------
# Pure-JAX references for sanity checks
# ---------------------------------------------------------------------------
def _reference(inputs, indices, output_shape, params, eps=1e-5):
    n, c, H, W = output_shape
    flat = jnp.zeros((n, c, H * W), jnp.float32)
    upd = inputs.reshape(n, c, -1).astype(jnp.float32)
    idxf = indices.reshape(n, c, -1)
    flat = flat.at[jnp.arange(n)[:, None, None],
                   jnp.arange(c)[None, :, None], idxf].set(upd)
    x = flat.reshape(n, c, H, W)

    def cbr(x, p):
        out = jax.lax.conv_general_dilated(
            x, p["w"], (1, 1), ((1, 1), (1, 1)),
            dimension_numbers=("NCHW", "OIHW", "NCHW"),
            precision=jax.lax.Precision.HIGHEST)
        out = out + p["b"][None, :, None, None]
        scale = (p["gamma"] / jnp.sqrt(p["var"] + eps))[None, :, None, None]
        out = (out - p["mean"][None, :, None, None]) * scale + p["beta"][None, :, None, None]
        return jnp.maximum(out, 0.0)

    return x, cbr(cbr(x, params["conv1"]), params["conv2"])


def _reference_bf16_gemm(unpooled_nhwc, params):
    # mirrors the kernel's bf16-input / f32-accumulate GEMM math (tight check)
    def cbr(x, p):
        w2d, b2d = _fold_bn(p)
        n, h, w, _ = x.shape
        pat = _im2col_3x3(x).astype(jnp.bfloat16)
        acc = jnp.dot(pat, w2d.astype(jnp.bfloat16),
                      preferred_element_type=jnp.float32)
        return jnp.maximum(acc + b2d, 0.0).reshape(n, h, w, -1)

    return cbr(cbr(unpooled_nhwc, params["conv1"]), params["conv2"])


if __name__ == "__main__":
    key = jax.random.PRNGKey(0)
    k1, k2, k3, kp = jax.random.split(key, 4)

    N, IN, OUT, H, W = 2, 4, 8, 16, 16
    oh, ow = H // 2, W // 2

    pooled = jax.random.normal(k1, (N, IN, oh, ow), jnp.float32)
    di = jax.random.randint(k2, (N, IN, oh, ow), 0, 2)
    dj = jax.random.randint(k3, (N, IN, oh, ow), 0, 2)
    ii = jnp.arange(oh)[None, None, :, None]
    jj = jnp.arange(ow)[None, None, None, :]
    indices = ((2 * ii + di) * W + (2 * jj + dj)).astype(jnp.int32)

    params = init_params(kp, IN, OUT)
    output_shape = (N, IN, H, W)

    out = segnet_up2_forward(pooled, indices, output_shape, params)
    jax.block_until_ready(out)
    assert out.shape == (N, OUT, H, W)

    # 1) unpool kernel exactness
    unpooled_kernel_nhwc = maxunpool2x2(pooled, indices, H, W)
    x_ref_nchw, ref_out = _reference(pooled, indices, output_shape, params)
    assert jnp.array_equal(jnp.transpose(unpooled_kernel_nhwc, (0, 3, 1, 2)),
                           x_ref_nchw)

    # 2) tight check against a pure-JAX bf16 GEMM reference (same math)
    tight = _reference_bf16_gemm(jnp.transpose(x_ref_nchw, (0, 2, 3, 1)), params)
    tight = jnp.transpose(tight, (0, 3, 1, 2))
    assert jnp.allclose(out, tight, atol=2e-3, rtol=2e-3)

    # 3) loose check against a full-precision conv reference (bf16 matmul error)
    assert jnp.allclose(out, ref_out, atol=5e-2, rtol=5e-2)

    print("KERNEL_OK")
</pallas_src>

<mosaic_0001>
module attributes {stable_mosaic.version = 11 : i64} {
  func.func @_unpool_kernel(%arg0: i32, %arg1: memref<16x8x4xf32, #tpu.memory_space<vmem>>, %arg2: memref<16x8x4xi32, #tpu.memory_space<vmem>>, %arg3: memref<16x2x8x8xf32, #tpu.memory_space<vmem>>) attributes {dimension_semantics = [#tpu.dimension_semantics<parallel>], iteration_bounds = array<i64: 1>, scalar_prefetch = 0 : i64, scratch_operands = 0 : i64, tpu.core_type = #tpu.core_type<tc>, window_params = [{transform_indices = @transform_0, window_bounds = array<i64: 16, 8, 4>}, {transform_indices = @transform_1, window_bounds = array<i64: 16, 8, 4>}, {transform_indices = @transform_2, window_bounds = array<i64: 16, 2, 8, 8>}]} {
    %c16_i32 = arith.constant 16 : i32
    %0 = arith.muli %arg0, %c16_i32 : i32
    %c0 = arith.constant 0 : index
    %c0_0 = arith.constant 0 : index
    %c0_1 = arith.constant 0 : index
    %1 = vector.load %arg1[%c0, %c0_0, %c0_1] : memref<16x8x4xf32, #tpu.memory_space<vmem>>, vector<16x8x4xf32>
    %c0_2 = arith.constant 0 : index
    %c0_3 = arith.constant 0 : index
    %c0_4 = arith.constant 0 : index
    %2 = vector.load %arg2[%c0_2, %c0_3, %c0_4] : memref<16x8x4xi32, #tpu.memory_space<vmem>>, vector<16x8x4xi32>
    %3 = tpu.iota {dimensions = array<i32: 0>} : vector<16x8x4xi32>
    %4 = tpu.iota {dimensions = array<i32: 1>} : vector<16x8x4xi32>
    %5 = vector.broadcast %0 : i32 to vector<16x8x4xi32>
    %6 = arith.addi %5, %3 : vector<16x8x4xi32>
    %c8_i32 = arith.constant 8 : i32
    %c0_i32 = arith.constant 0 : i32
    %7 = arith.cmpi eq, %c8_i32, %c0_i32 : i32
    %c1_i32 = arith.constant 1 : i32
    %8 = arith.select %7, %c1_i32, %c8_i32 : i32
    %9 = vector.broadcast %8 : i32 to vector<16x8x4xi32>
    %10 = arith.remsi %6, %9 : vector<16x8x4xi32>
    %c0_i32_5 = arith.constant 0 : i32
    %11 = vector.broadcast %c0_i32_5 : i32 to vector<16x8x4xi32>
    %12 = arith.cmpi ne, %10, %11 : vector<16x8x4xi32>
    %c0_i32_6 = arith.constant 0 : i32
    %13 = vector.broadcast %c0_i32_6 : i32 to vector<16x8x4xi32>
    %14 = arith.cmpi slt, %10, %13 : vector<16x8x4xi32>
    %c0_i32_7 = arith.constant 0 : i32
    %15 = arith.cmpi slt, %8, %c0_i32_7 : i32
    %16 = vector.broadcast %15 : i1 to vector<16x8x4xi1>
    %17 = vector.broadcast %16 : vector<16x8x4xi1> to vector<16x8x4xi1>
    %18 = arith.xori %14, %17 : vector<16x8x4xi1>
    %19 = arith.andi %18, %12 : vector<16x8x4xi1>
    %20 = vector.broadcast %8 : i32 to vector<16x8x4xi32>
    %21 = arith.addi %10, %20 : vector<16x8x4xi32>
    %22 = arith.select %19, %21, %10 : vector<16x8x4xi1>, vector<16x8x4xi32>
    %c2_i32 = arith.constant 2 : i32
    %23 = vector.broadcast %c2_i32 : i32 to vector<16x8x4xi32>
    %24 = arith.muli %23, %22 : vector<16x8x4xi32>
    %c0_i32_8 = arith.constant 0 : i32
    %25 = vector.broadcast %c0_i32_8 : i32 to vector<16x8x4xi32>
    %26 = arith.addi %24, %25 : vector<16x8x4xi32>
    %c16_i32_9 = arith.constant 16 : i32
    %27 = vector.broadcast %c16_i32_9 : i32 to vector<16x8x4xi32>
    %28 = arith.muli %26, %27 : vector<16x8x4xi32>
    %c2_i32_10 = arith.constant 2 : i32
    %29 = vector.broadcast %c2_i32_10 : i32 to vector<16x8x4xi32>
    %30 = arith.muli %29, %4 : vector<16x8x4xi32>
    %31 = arith.addi %28, %30 : vector<16x8x4xi32>
    %32 = arith.cmpi eq, %2, %31 : vector<16x8x4xi32>
    %cst = arith.constant 0.000000e+00 : f32
    %33 = vector.broadcast %cst : f32 to vector<16x8x4xf32>
    %34 = arith.select %32, %1, %33 : vector<16x8x4xi1>, vector<16x8x4xf32>
    %c1_i32_11 = arith.constant 1 : i32
    %35 = vector.broadcast %c1_i32_11 : i32 to vector<16x8x4xi32>
    %36 = arith.addi %31, %35 : vector<16x8x4xi32>
    %37 = arith.cmpi eq, %2, %36 : vector<16x8x4xi32>
    %cst_12 = arith.constant 0.000000e+00 : f32
    %38 = vector.broadcast %cst_12 : f32 to vector<16x8x4xf32>
    %39 = arith.select %37, %1, %38 : vector<16x8x4xi1>, vector<16x8x4xf32>
    %40 = tpu.concatenate %34, %39 in 2 : vector<16x8x4xf32>, vector<16x8x4xf32> -> vector<16x8x8xf32>
    %c0_13 = arith.constant 0 : index
    %c0_14 = arith.constant 0 : index
    %c0_15 = arith.constant 0 : index
    %c0_16 = arith.constant 0 : index
    %41 = vector.load %arg3[%c0_13, %c0_14, %c0_15, %c0_16] : memref<16x2x8x8xf32, #tpu.memory_space<vmem>>, vector<16x1x8x8xf32>
    %42 = vector.shape_cast %41 : vector<16x1x8x8xf32> to vector<16x8x8xf32>
    %43 = vector.shape_cast %40 : vector<16x8x8xf32> to vector<16x1x8x8xf32>
    tpu.vector_store %arg3[%c0_13, %c0_14, %c0_15, %c0_16], %43 {strides = array<i32>} : memref<16x2x8x8xf32, #tpu.memory_space<vmem>>, vector<16x1x8x8xf32>,
    %c2_i32_17 = arith.constant 2 : i32
    %44 = vector.broadcast %c2_i32_17 : i32 to vector<16x8x4xi32>
    %45 = arith.muli %44, %22 : vector<16x8x4xi32>
    %c1_i32_18 = arith.constant 1 : i32
    %46 = vector.broadcast %c1_i32_18 : i32 to vector<16x8x4xi32>
    %47 = arith.addi %45, %46 : vector<16x8x4xi32>
    %c16_i32_19 = arith.constant 16 : i32
    %48 = vector.broadcast %c16_i32_19 : i32 to vector<16x8x4xi32>
    %49 = arith.muli %47, %48 : vector<16x8x4xi32>
    %c2_i32_20 = arith.constant 2 : i32
    %50 = vector.broadcast %c2_i32_20 : i32 to vector<16x8x4xi32>
    %51 = arith.muli %50, %4 : vector<16x8x4xi32>
    %52 = arith.addi %49, %51 : vector<16x8x4xi32>
    %53 = arith.cmpi eq, %2, %52 : vector<16x8x4xi32>
    %cst_21 = arith.constant 0.000000e+00 : f32
    %54 = vector.broadcast %cst_21 : f32 to vector<16x8x4xf32>
    %55 = arith.select %53, %1, %54 : vector<16x8x4xi1>, vector<16x8x4xf32>
    %c1_i32_22 = arith.constant 1 : i32
    %56 = vector.broadcast %c1_i32_22 : i32 to vector<16x8x4xi32>
    %57 = arith.addi %52, %56 : vector<16x8x4xi32>
    %58 = arith.cmpi eq, %2, %57 : vector<16x8x4xi32>
    %cst_23 = arith.constant 0.000000e+00 : f32
    %59 = vector.broadcast %cst_23 : f32 to vector<16x8x4xf32>
    %60 = arith.select %58, %1, %59 : vector<16x8x4xi1>, vector<16x8x4xf32>
    %61 = tpu.concatenate %55, %60 in 2 : vector<16x8x4xf32>, vector<16x8x4xf32> -> vector<16x8x8xf32>
    %c0_24 = arith.constant 0 : index
    %c1 = arith.constant 1 : index
    %c0_25 = arith.constant 0 : index
    %c0_26 = arith.constant 0 : index
    %62 = vector.load %arg3[%c0_24, %c1, %c0_25, %c0_26] : memref<16x2x8x8xf32, #tpu.memory_space<vmem>>, vector<16x1x8x8xf32>
    %63 = vector.shape_cast %62 : vector<16x1x8x8xf32> to vector<16x8x8xf32>
    %64 = vector.shape_cast %61 : vector<16x8x8xf32> to vector<16x1x8x8xf32>
    tpu.vector_store %arg3[%c0_24, %c1, %c0_25, %c0_26], %64 {strides = array<i32>} : memref<16x2x8x8xf32, #tpu.memory_space<vmem>>, vector<16x1x8x8xf32>,
    return
  }
  func.func @transform_0(%arg0: i32) -> (i32, i32, i32) {
    %c0_i32 = arith.constant 0 : i32
    %c0_i32_0 = arith.constant 0 : i32
    %c0_i32_1 = arith.constant 0 : i32
    return %arg0, %c0_i32, %c0_i32_0 : i32, i32, i32
  }
  func.func @transform_1(%arg0: i32) -> (i32, i32, i32) {
    %c0_i32 = arith.constant 0 : i32
    %c0_i32_0 = arith.constant 0 : i32
    %c0_i32_1 = arith.constant 0 : i32
    return %arg0, %c0_i32, %c0_i32_0 : i32, i32, i32
  }
  func.func @transform_2(%arg0: i32) -> (i32, i32, i32, i32) {
    %c0_i32 = arith.constant 0 : i32
    %c0_i32_0 = arith.constant 0 : i32
    %c0_i32_1 = arith.constant 0 : i32
    %c0_i32_2 = arith.constant 0 : i32
    return %arg0, %c0_i32, %c0_i32_0, %c0_i32_1 : i32, i32, i32, i32
  }
}

</mosaic_0001>

<bundles_post_ra>
// kernel: tpu_custom_call.1
= control target key start
LH: loop header
LB: loop body
LE: loop exit
PB: predicated region body
PF: predicated region fallthrough
CT: control target
= control target key end

     0   :  { %v44_v0 = vlaneseq  ;;  %s727_s25 = smov 4   ;;  %s1473_s1 = inlined_call_operand.vmem [shape: s32[16,8,4], index: 1, kind: input, shape index: {}]   ;;  %s1474_s0 = inlined_call_operand.vmem [shape: f32[16,8,4], index: 0, kind: input, shape index: {}]   ;;  %s1475_s2 = inlined_call_operand.vmem [shape: f32[16,2,8,8], index: 2, kind: output, shape index: {}]  }
   0x1   :  { %v748_v3 = vld [vmem:[%s1473_s1] sm:$0xff]  ;;  %v770_v9 = vld [vmem:[%s1473_s1 + $0x10] sm:$0xff]  ;;  %v775_v10 = vld [vmem:[%s1473_s1 + $0x18] sm:$0xff] }
   0x2   :  { %v45_v1 = vshrl.u32 %v44_v0, 7  ;;  %v756_v5 = vld [vmem:[%s1474_s0] sm:$0xff]  ;;  %v780_v11 = vld [vmem:[%s1473_s1 + $0x8] sm:$0xff]  ;;  %v794_v15 = vld [vmem:[%s1474_s0 + $0x10] sm:$0xff] }
   0x3   :  { %v807_v18 = vld [vmem:[%s1474_s0 + $0x8] sm:$0xff]  ;;  %v816_v21 = vld [vmem:[%s1473_s1 + $0x20] sm:$0xff]  ;;  %v830_v24 = vld [vmem:[%s1474_s0 + $0x18] sm:$0xff] }
   0x4   :  { %v743_v2 = vmul.u32 2, %v45_v1  ;;  %v844_v28 = vld [vmem:[%s1473_s1 + $0x28] sm:$0xff]  ;;  %v850_v29 = vld [vmem:[%s1474_s0 + $0x20] sm:$0xff]  ;;  %v859_v32 = vld [vmem:[%s1473_s1 + $0x30] sm:$0xff] }
   0x5   :  { %v865_v33 = vld [vmem:[%s1474_s0 + $0x28] sm:$0xff]  ;;  %v874_v36 = vld [vmem:[%s1473_s1 + $0x38] sm:$0xff]  ;;  %v880_v37 = vld [vmem:[%s1474_s0 + $0x30] sm:$0xff] }
   0x6   :  { %v751_v4 = vadd.s32 64, %v743_v2  ;;  %v759_v6 = vadd.s32 1, %v743_v2  ;;  %v762_v7 = vadd.s32 96, %v743_v2  ;;  %v765_v8 = vadd.s32 32, %v743_v2  ;;  %v887_v39 = vld [vmem:[%s1473_s1 + $0x40] sm:$0xff]  ;;  %v893_v40 = vld [vmem:[%s1474_s0 + $0x38] sm:$0xff] }
   0x7   :  { %v783_v12 = vadd.s32 160, %v743_v2  ;;  %v786_v13 = vadd.s32 128, %v743_v2  ;;  %v789_v14 = vadd.s32 192, %v743_v2  ;;  %v822_v23 = vadd.s32 224, %v743_v2  ;;  %v903_v43 = vld [vmem:[%s1473_s1 + $0x48] sm:$0xff]  ;;  %v908_v44 = vld [vmem:[%s1474_s0 + $0x40] sm:$0xff] }
   0x8   :  { %v797_v16 = vadd.s32 1, %v751_v4  ;;  %vm351_vm0 = vcmp.eq.s32.totalorder %v748_v3, %v759_v6  ;;  %v802_v17 = vadd.s32 1, %v762_v7  ;;  %v810_v19 = vadd.s32 1, %v765_v8  ;;  %v916_v45 = vld [vmem:[%s1473_s1 + $0x58] sm:$0xff]  ;;  %v921_v46 = vld [vmem:[%s1473_s1 + $0x50] sm:$0xff]  ;;  %v926_v47 = vld [vmem:[%s1473_s1 + $0x68] sm:$0xff] }
   0x9   :  { %v367_v20 = vsel %vm351_vm0, %v756_v5, 0.0  ;;  %v819_v22 = vadd.s32 1, %v786_v13  ;;  %v837_v25 = vadd.s32 1, %v783_v12  ;;  %v341_v30 = vadd.s32 1, %v789_v14  ;;  %v932_v49 = vld [vmem:[%s1473_s1 + $0x60] sm:$0xff]  ;;  %v937_v50 = vld [vmem:[%s1473_s1 + $0x78] sm:$0xff] }
   0xa   :  { %vm353_vm1 = vcmp.eq.s32.totalorder %v770_v9, %v797_v16  ;;  %399 = vrot.lane.b32.xlu0 %v367_v20, %s727_s25  ;;  %vm354_vm2 = vcmp.eq.s32.totalorder %v775_v10, %v802_v17  ;;  %vm352_vm3 = vcmp.eq.s32.totalorder %v780_v11, %v810_v19  ;;  %v342_v34 = vadd.s32 1, %v822_v23  ;;  %v942_v51 = vld [vmem:[%s1473_s1 + $0x70] sm:$0xff]  ;;  %v948_v52 = vld [vmem:[%s1474_s0 + $0x48] sm:$0xff]  ;;  %v962_v56 = vld [vmem:[%s1474_s0 + $0x58] sm:$0xff] }
   0xb   :  { %v369_v26 = vsel %vm353_vm1, %v794_v15, 0.0  ;;  %v368_v27 = vsel %vm352_vm3, %v807_v18, 0.0  ;;  %vm355_vm4 = vcmp.eq.s32.totalorder %v816_v21, %v819_v22  ;;  %v370_v31 = vsel %vm354_vm2, %v830_v24, 0.0  ;;  %v969_v57 = vld [vmem:[%s1474_s0 + $0x50] sm:$0xff]  ;;  %v976_v58 = vld [vmem:[%s1474_s0 + $0x68] sm:$0xff]  ;;  %v984_v59 = vld [vmem:[%s1474_s0 + $0x60] sm:$0xff] }
   0xc   :  { %403 = vrot.lane.b32.xlu1 %v369_v26, %s727_s25  ;;  %vm356_vm5 = vcmp.eq.s32.totalorder %v844_v28, %v837_v25  ;;  %v371_v35 = vsel %vm355_vm4, %v850_v29, 0.0  ;;  %vm357_vm6 = vcmp.eq.s32.totalorder %v859_v32, %v341_v30  ;;  %vm358_vm7 = vcmp.eq.s32.totalorder %v874_v36, %v342_v34  ;;  %v991_v60 = vld [vmem:[%s1474_s0 + $0x78] sm:$0xff]  ;;  %v997_v61 = vld [vmem:[%s1474_s0 + $0x70] sm:$0xff] }
   0xd   :  { %v372_v38 = vsel %vm356_vm5, %v865_v33, 0.0  ;;  %v897_v41 = vadd.s32 16, %v743_v2  ;;  %v373_v42 = vsel %vm357_vm6, %v880_v37, 0.0  ;;  %vm359_vm8 = vcmp.eq.s32.totalorder %v887_v39, %v759_v6 }
   0xe   :  { %401 = vrot.lane.b32.xlu0 %v368_v27, %s727_s25  ;;  %v374_v48 = vsel %vm358_vm7, %v893_v40, 0.0  ;;  %vm360_vm9 = vcmp.eq.s32.totalorder %v903_v43, %v810_v19  ;;  %v953_v53 = vadd.s32 48, %v743_v2  ;;  %v375_v55 = vsel %vm359_vm8, %v908_v44, 0.0 }
   0xf   :  { %v956_v54 = vadd.s32 1, %v897_v41  ;;  %vm362_vm10 = vcmp.eq.s32.totalorder %v916_v45, %v802_v17  ;;  %vm361_vm11 = vcmp.eq.s32.totalorder %v921_v46, %v797_v16  ;;  %vm364_vm12 = vcmp.eq.s32.totalorder %v926_v47, %v837_v25 }
  0x10   :  { %405 = vrot.lane.b32.xlu1 %v370_v31, %s727_s25  ;;  %vm363_vm13 = vcmp.eq.s32.totalorder %v932_v49, %v819_v22  ;;  %vm366_vm14 = vcmp.eq.s32.totalorder %v937_v50, %v342_v34  ;;  %vm365_vm15 = vcmp.eq.s32.totalorder %v942_v51, %v341_v30  ;;  %v1001_v62 = vadd.s32 112, %v743_v2 }
  0x11   :  { %v376_v63 = vsel %vm360_vm9, %v948_v52, 0.0  ;;  %v1008_v0 = vadd.s32 80, %v743_v2  ;;  %v1011_v1 = vadd.s32 144, %v743_v2  ;;  %v378_v6 = vsel %vm362_vm10, %v962_v56, 0.0 }
  0x12   :  { %407 = vrot.lane.b32.xlu0 %v371_v35, %s727_s25  ;;  %v377_v20 = vsel %vm361_vm11, %v969_v57, 0.0  ;;  %v1023_v19 = vadd.s32 1, %v953_v53  ;;  %vm577_vm0 = vcmp.eq.s32.totalorder %v748_v3, %v956_v54  ;;  %v380_v22 = vsel %vm364_vm12, %v976_v58, 0.0 }
  0x13   :  { %v379_v26 = vsel %vm363_vm13, %v984_v59, 0.0  ;;  %v382_v17 = vsel %vm366_vm14, %v991_v60, 0.0  ;;  %v381_v27 = vsel %vm365_vm15, %v997_v61, 0.0  ;;  %v1036_v16 = vadd.s32 1, %v1001_v62 }
  0x14   :  { %409 = vrot.lane.b32.xlu1 %v372_v38, %s727_s25  ;;  %v1039_v30 = vadd.s32 176, %v743_v2  ;;  %v1042_v31 = vadd.s32 240, %v743_v2  ;;  %v1045_v25 = vadd.s32 208, %v743_v2  ;;  %v593_v34 = vsel %vm577_vm0, %v756_v5, 0.0 }
  0x15   :  { %v1049_v35 = vadd.s32 1, %v1008_v0  ;;  %v1052_v38 = vadd.s32 1, %v1011_v1  ;;  %vm305_vm1 = vcmp.eq.s32.totalorder %v770_v9, %v751_v4  ;;  %vm578_vm2 = vcmp.eq.s32.totalorder %v780_v11, %v1023_v19 }
  0x16   :  { %411 = vrot.lane.b32.xlu0 %v373_v42, %s727_s25  ;;  %v1060_v42 = vsel %vm305_vm1, %v794_v15, 0.0  ;;  %vm303_vm3 = vcmp.eq.s32.totalorder %v748_v3, %v743_v2  ;;  %vm306_vm4 = vcmp.eq.s32.totalorder %v775_v10, %v762_v7  ;;  %vm304_vm5 = vcmp.eq.s32.totalorder %v780_v11, %v765_v8 }
  0x17   :  { %vm308_vm6 = vcmp.eq.s32.totalorder %v844_v28, %v783_v12  ;;  %vm307_vm7 = vcmp.eq.s32.totalorder %v816_v21, %v786_v13  ;;  %vm310_vm8 = vcmp.eq.s32.totalorder %v874_v36, %v822_v23  ;;  %vm309_vm9 = vcmp.eq.s32.totalorder %v859_v32, %v789_v14 }
  0x18   :  { %413 = vrot.lane.b32.xlu1 %v374_v48, %s727_s25  ;;  %v1069_v48 = vsel %vm303_vm3, %v756_v5, 0.0  ;;  %vm312_vm10 = vcmp.eq.s32.totalorder %v903_v43, %v765_v8  ;;  %vm311_vm11 = vcmp.eq.s32.totalorder %v887_v39, %v743_v2  ;;  %vm314_vm12 = vcmp.eq.s32.totalorder %v916_v45, %v762_v7 }
  0x19   :  { %vm313_vm13 = vcmp.eq.s32.totalorder %v921_v46, %v751_v4  ;;  %vm316_vm14 = vcmp.eq.s32.totalorder %v926_v47, %v783_v12  ;;  %vm315_vm15 = vcmp.eq.s32.totalorder %v932_v49, %v786_v13  ;;  %vm318_vm0 = vcmp.eq.s32.totalorder %v937_v50, %v822_v23 }
  0x1a   :  { %415 = vrot.lane.b32.xlu0 %v375_v55, %s727_s25  ;;  %v1072_v55 = vsel %vm306_vm4, %v830_v24, 0.0  ;;  %v1117_v8 = vsel %vm313_vm13, %v969_v57, 0.0  ;;  %v1123_v2 = vsel %vm316_vm14, %v976_v58, 0.0  ;;  %vm317_vm1 = vcmp.eq.s32.totalorder %v942_v51, %v789_v14 }
  0x1b   :  { %1476 = vst [vmem:[#allocation2_spill] sm:$0xff] %v1072_v55  ;;  %v1090_v55 = vsel %vm307_vm7, %v850_v29, 0.0  ;;  %v1132_v4 = vsel %vm315_vm15, %v984_v59, 0.0  ;;  %v1135_v7 = vsel %vm318_vm0, %v991_v60, 0.0  ;;  %v1138_v12 = vsel %vm317_vm1, %v997_v61, 0.0 }
  0x1c   :  { %417 = vrot.lane.b32.xlu1 %v376_v63, %s727_s25  ;;  %v1075_v63 = vsel %vm304_vm5, %v807_v18, 0.0  ;;  %vm530_vm3 = vcmp.eq.s32.totalorder %v780_v11, %v953_v53  ;;  %vm529_vm4 = vcmp.eq.s32.totalorder %v748_v3, %v897_v41  ;;  %vm532_vm5 = vcmp.eq.s32.totalorder %v775_v10, %v1001_v62 }
  0x1d   :  { %1477 = vst [vmem:[#allocation3_spill] sm:$0xff] %v1075_v63  ;;  %v1093_v63 = vsel %vm310_vm8, %v893_v40, 0.0  ;;  %v1144_v13 = vsel %vm530_vm3, %v807_v18, 0.0  ;;  %v1153_v14 = vsel %vm529_vm4, %v756_v5, 0.0  ;;  %v1156_v23 = vsel %vm532_vm5, %v830_v24, 0.0 }
  0x1e   :  { %419 = vrot.lane.b32.xlu0 %v377_v20, %s727_s25  ;;  %v1081_v20 = vsel %vm308_vm6, %v865_v33, 0.0  ;;  %1479 = vst [vmem:[#allocation5_spill] sm:$0xff] %v1093_v63  ;;  %v1111_v63 = vsel %vm311_vm11, %v908_v44, 0.0  ;;  %vm531_vm6 = vcmp.eq.s32.totalorder %v770_v9, %v1008_v0  ;;  %vm534_vm7 = vcmp.eq.s32.totalorder %v844_v28, %v1039_v30 }
  0x1f   :  { %1478 = vst [vmem:[#allocation4_spill] sm:$0xff] %v1081_v20  ;;  %v1102_v20 = vsel %vm312_vm10, %v948_v52, 0.0  ;;  %vm579_vm8 = vcmp.eq.s32.totalorder %v770_v9, %v1049_v35  ;;  %v1167_v3 = vsel %vm534_vm7, %v865_v33, 0.0  ;;  %vm536_vm10 = vcmp.eq.s32.totalorder %v874_v36, %v1042_v31 }
  0x20   :  { %421 = vrot.lane.b32.xlu1 %v378_v6, %s727_s25  ;;  %v1096_v6 = vsel %vm309_vm9, %v880_v37, 0.0  ;;  %vm533_vm9 = vcmp.eq.s32.totalorder %v816_v21, %v1011_v1  ;;  %v594_v5 = vsel %vm578_vm2, %v807_v18, 0.0  ;;  %vm535_vm11 = vcmp.eq.s32.totalorder %v859_v32, %v1045_v25 }
  0x21   :  { %1480 = vst [vmem:[#allocation6_spill] sm:$0xff] %v1096_v6  ;;  %v1114_v6 = vsel %vm314_vm12, %v962_v56, 0.0  ;;  %vm580_vm12 = vcmp.eq.s32.totalorder %v775_v10, %v1036_v16  ;;  %v566_v9 = vadd.s32 1, %v1039_v30  ;;  %v595_v11 = vsel %vm579_vm8, %v794_v15, 0.0 }
  0x22   :  { %423 = vrot.lane.b32.xlu0 %v379_v26, %s727_s25  ;;  %v1178_v26 = vsel %vm533_vm9, %v850_v29, 0.0  ;;  %vm581_vm2 = vcmp.eq.s32.totalorder %v816_v21, %v1052_v38  ;;  %v567_v18 = vadd.s32 1, %v1045_v25  ;;  %vm538_vm13 = vcmp.eq.s32.totalorder %v903_v43, %v953_v53 }
  0x23   :  { %v1201_v10 = vsel %vm538_vm13, %v948_v52, 0.0  ;;  %vm537_vm14 = vcmp.eq.s32.totalorder %v887_v39, %v897_v41  ;;  %vm582_vm15 = vcmp.eq.s32.totalorder %v844_v28, %v566_v9  ;;  %vm540_vm1 = vcmp.eq.s32.totalorder %v916_v45, %v1001_v62 }
  0x24   :  { %425 = vrot.lane.b32.xlu1 %v380_v22, %s727_s25  ;;  %v1159_v22 = vsel %vm531_vm6, %v794_v15, 0.0  ;;  %v568_v15 = vadd.s32 1, %v1042_v31  ;;  %v1209_v21 = vsel %vm537_vm14, %v908_v44, 0.0  ;;  %vm583_vm0 = vcmp.eq.s32.totalorder %v859_v32, %v567_v18 }
  0x25   :  { %v1218_v41 = vsel %vm540_vm1, %v962_v56, 0.0  ;;  %vm539_vm3 = vcmp.eq.s32.totalorder %v921_v46, %v1008_v0  ;;  %vm585_vm5 = vcmp.eq.s32.totalorder %v887_v39, %v956_v54  ;;  %vm542_vm6 = vcmp.eq.s32.totalorder %v926_v47, %v1039_v30 }
  0x26   :  { %427 = vrot.lane.b32.xlu0 %v381_v27, %s727_s25  ;;  %v1190_v27 = vsel %vm535_vm11, %v880_v37, 0.0  ;;  %vm584_vm4 = vcmp.eq.s32.totalorder %v874_v36, %v568_v15  ;;  %v1225_v28 = vsel %vm539_vm3, %v969_v57, 0.0  ;;  %vm541_vm7 = vcmp.eq.s32.totalorder %v932_v49, %v1011_v1 }
  0x27   :  { %v600_v32 = vsel %vm584_vm4, %v893_v40, 0.0  ;;  %vm586_vm8 = vcmp.eq.s32.totalorder %v903_v43, %v1023_v19  ;;  %v1243_v36 = vsel %vm541_vm7, %v984_v59, 0.0  ;;  %vm587_vm9 = vcmp.eq.s32.totalorder %v921_v46, %v1049_v35  ;;  %v1483_v19 = vld [vmem:[#allocation4_spill] sm:$0xff] }
  0x28   :  { %429 = vrot.lane.b32.xlu1 %v382_v17, %s727_s25  ;;  %v1181_v17 = vsel %vm536_vm10, %v893_v40, 0.0  ;;  %vm544_vm10 = vcmp.eq.s32.totalorder %v937_v50, %v1042_v31  ;;  %v602_v39 = vsel %vm586_vm8, %v948_v52, 0.0  ;;  %vm543_vm11 = vcmp.eq.s32.totalorder %v942_v51, %v1045_v25  ;;  %v1484_v31 = vld [vmem:[#allocation6_spill] sm:$0xff] }
  0x29   :  { %v1253_v40 = vsel %vm544_vm10, %v991_v60, 0.0  ;;  %v1261_v43 = vsel %vm543_vm11, %v997_v61, 0.0  ;;  %vm590_vm13 = vcmp.eq.s32.totalorder %v926_v47, %v566_v9  ;;  %vm591_vm14 = vcmp.eq.s32.totalorder %v942_v51, %v567_v18 }
  0x2a   :  { %625 = vrot.lane.b32.xlu0 %v593_v34, %s727_s25  ;;  %v596_v34 = vsel %vm580_vm12, %v830_v24, 0.0  ;;  %v598_v24 = vsel %vm582_vm15, %v865_v33, 0.0  ;;  %v1235_v33 = vsel %vm542_vm6, %v976_v58, 0.0  ;;  %vm588_vm12 = vcmp.eq.s32.totalorder %v916_v45, %v1036_v16 }
  0x2b   :  { %v604_v46 = vsel %vm588_vm12, %v962_v56, 0.0  ;;  %v606_v45 = vsel %vm590_vm13, %v976_v58, 0.0  ;;  %vm592_vm15 = vcmp.eq.s32.totalorder %v937_v50, %v568_v15  ;;  %vm464_vm1 = vcmask 64512  }
  0x2c   :  { %627 = vrot.lane.b32.xlu1 %v594_v5, %s727_s25  ;;  %v597_v5 = vsel %vm581_vm2, %v850_v29, 0.0  ;;  %v599_v29 = vsel %vm583_vm0, %v880_v37, 0.0  ;;  %v601_v37 = vsel %vm585_vm5, %v908_v44, 0.0  ;;  %v603_v44 = vsel %vm587_vm9, %v969_v57, 0.0  ;;  %v1481_v57 = vld [vmem:[#allocation3_spill] sm:$0xff] }
  0x2d   :  { %vm589_vm2 = vcmp.eq.s32.totalorder %v932_v49, %v1052_v38  ;;  %v607_v49 = vsel %vm591_vm14, %v997_v61, 0.0  ;;  %v608_v53 = vsel %vm592_vm15, %v991_v60, 0.0  ;;  %vm447_vm0 = vcmask 31744   ;;  %v1482_v60 = vld [vmem:[#allocation2_spill] sm:$0xff]  ;;  %v1485_v38 = vld [vmem:[#allocation5_spill] sm:$0xff] }
  0x2e   :  { %629 = vrot.lane.b32.xlu0 %v595_v11, %s727_s25  ;;  %v605_v52 = vsel %vm589_vm2, %v984_v59, 0.0 }
  0x30   :  { %631 = vrot.lane.b32.xlu1 %v596_v34, %s727_s25 }
  0x32   :  { %633 = vrot.lane.b32.xlu0 %v597_v5, %s727_s25 }
  0x34   :  { %635 = vrot.lane.b32.xlu1 %v598_v24, %s727_s25 }
  0x36   :  { %637 = vrot.lane.b32.xlu0 %v599_v29, %s727_s25 }
  0x38   :  { %639 = vrot.lane.b32.xlu1 %v600_v32, %s727_s25 }
  0x3a   :  { %641 = vrot.lane.b32.xlu0 %v601_v37, %s727_s25 }
  0x3c   :  { %643 = vrot.lane.b32.xlu1 %v602_v39, %s727_s25 }
  0x3e   :  { %645 = vrot.lane.b32.xlu0 %v603_v44, %s727_s25 }
  0x40   :  { %647 = vrot.lane.b32.xlu1 %v604_v46, %s727_s25 }
  0x42   :  { %649 = vrot.lane.b32.xlu0 %v605_v52, %s727_s25 }
  0x44   :  { %651 = vrot.lane.b32.xlu1 %v606_v45, %s727_s25 }
  0x46   :  { %653 = vrot.lane.b32.xlu0 %v607_v49, %s727_s25 }
  0x48   :  { %655 = vrot.lane.b32.xlu1 %v608_v53, %s727_s25 }
  0x7c   :  { %v400_v47 = vpop.permute.xlu0 %399 }
  0x7d   :  { %v448_v51 = vsel %vm447_vm0, %v1069_v48, %v400_v47 }
  0x7e   :  { %v404_v54 = vpop.permute.xlu1 %403  ;;  %465 = vst.msk [vmem:[%s1475_s2] sm:$0xff] %vm464_vm1, %v448_v51 }
  0x7f   :  { %v450_v50 = vsel %vm447_vm0, %v1060_v42, %v404_v54 }
  0x80   :  { %467 = vst.msk [vmem:[%s1475_s2 + $0x20] sm:$0xff] %vm464_vm1, %v450_v50  ;;  %v402_v56 = vpop.permute.xlu0 %401 }
  0x81   :  { %v449_v58 = vsel %vm447_vm0, %v1481_v57, %v402_v56 }
  0x82   :  { %v406_v59 = vpop.permute.xlu1 %405  ;;  %466 = vst.msk [vmem:[%s1475_s2 + $0x10] sm:$0xff] %vm464_vm1, %v449_v58 }
  0x83   :  { %v451_v61 = vsel %vm447_vm0, %v1482_v60, %v406_v59 }
  0x84   :  { %468 = vst.msk [vmem:[%s1475_s2 + $0x30] sm:$0xff] %vm464_vm1, %v451_v61  ;;  %v408_v62 = vpop.permute.xlu0 %407 }
  0x85   :  { %v452_v0 = vsel %vm447_vm0, %v1090_v55, %v408_v62 }
  0x86   :  { %v410_v1 = vpop.permute.xlu1 %409  ;;  %469 = vst.msk [vmem:[%s1475_s2 + $0x40] sm:$0xff] %vm464_vm1, %v452_v0 }
  0x87   :  { %v453_v16 = vsel %vm447_vm0, %v1483_v19, %v410_v1 }
  0x88   :  { %470 = vst.msk [vmem:[%s1475_s2 + $0x50] sm:$0xff] %vm464_vm1, %v453_v16  ;;  %v412_v30 = vpop.permute.xlu0 %411 }
  0x89   :  { %v454_v25 = vsel %vm447_vm0, %v1484_v31, %v412_v30 }
  0x8a   :  { %v414_v35 = vpop.permute.xlu1 %413  ;;  %471 = vst.msk [vmem:[%s1475_s2 + $0x60] sm:$0xff] %vm464_vm1, %v454_v25 }
  0x8b   :  { %v455_v42 = vsel %vm447_vm0, %v1485_v38, %v414_v35 }
  0x8c   :  { %472 = vst.msk [vmem:[%s1475_s2 + $0x70] sm:$0xff] %vm464_vm1, %v455_v42  ;;  %v416_v48 = vpop.permute.xlu0 %415 }
  0x8d   :  { %v456_v55 = vsel %vm447_vm0, %v1111_v63, %v416_v48 }
  0x8e   :  { %v418_v9 = vpop.permute.xlu1 %417  ;;  %473 = vst.msk [vmem:[%s1475_s2 + $0x80] sm:$0xff] %vm464_vm1, %v456_v55 }
  0x8f   :  { %v457_v11 = vsel %vm447_vm0, %v1102_v20, %v418_v9 }
  0x90   :  { %474 = vst.msk [vmem:[%s1475_s2 + $0x90] sm:$0xff] %vm464_vm1, %v457_v11  ;;  %v420_v18 = vpop.permute.xlu0 %419 }
  0x91   :  { %v458_v34 = vsel %vm447_vm0, %v1117_v8, %v420_v18 }
  0x92   :  { %v422_v15 = vpop.permute.xlu1 %421  ;;  %475 = vst.msk [vmem:[%s1475_s2 + $0xa0] sm:$0xff] %vm464_vm1, %v458_v34 }
  0x93   :  { %v459_v63 = vsel %vm447_vm0, %v1114_v6, %v422_v15 }
  0x94   :  { %476 = vst.msk [vmem:[%s1475_s2 + $0xb0] sm:$0xff] %vm464_vm1, %v459_v63  ;;  %v424_v20 = vpop.permute.xlu0 %423 }
  0x95   :  { %v460_v5 = vsel %vm447_vm0, %v1132_v4, %v424_v20 }
  0x96   :  { %v426_v24 = vpop.permute.xlu1 %425  ;;  %477 = vst.msk [vmem:[%s1475_s2 + $0xc0] sm:$0xff] %vm464_vm1, %v460_v5 }
  0x97   :  { %v461_v8 = vsel %vm447_vm0, %v1123_v2, %v426_v24 }
  0x98   :  { %478 = vst.msk [vmem:[%s1475_s2 + $0xd0] sm:$0xff] %vm464_vm1, %v461_v8  ;;  %v428_v6 = vpop.permute.xlu0 %427 }
  0x99   :  { %v462_v29 = vsel %vm447_vm0, %v1138_v12, %v428_v6 }
  0x9a   :  { %v430_v32 = vpop.permute.xlu1 %429  ;;  %479 = vst.msk [vmem:[%s1475_s2 + $0xe0] sm:$0xff] %vm464_vm1, %v462_v29 }
  0x9b   :  { %v463_v4 = vsel %vm447_vm0, %v1135_v7, %v430_v32 }
  0x9c   :  { %480 = vst.msk [vmem:[%s1475_s2 + $0xf0] sm:$0xff] %vm464_vm1, %v463_v4  ;;  %v626_v2 = vpop.permute.xlu0 %625 }
  0x9d   :  { %v673_v37 = vsel %vm447_vm0, %v1153_v14, %v626_v2 }
  0x9e   :  { %v628_v39 = vpop.permute.xlu1 %627  ;;  %710 = vst.msk [vmem:[%s1475_s2 + $0x8] sm:$0xff] %vm464_vm1, %v673_v37 }
  0x9f   :  { %v674_v12 = vsel %vm447_vm0, %v1144_v13, %v628_v39 }
  0xa0   :  { %711 = vst.msk [vmem:[%s1475_s2 + $0x18] sm:$0xff] %vm464_vm1, %v674_v12  ;;  %v630_v7 = vpop.permute.xlu0 %629 }
  0xa1   :  { %v675_v44 = vsel %vm447_vm0, %v1159_v22, %v630_v7 }
  0xa2   :  { %v632_v46 = vpop.permute.xlu1 %631  ;;  %712 = vst.msk [vmem:[%s1475_s2 + $0x28] sm:$0xff] %vm464_vm1, %v675_v44 }
  0xa3   :  { %v676_v14 = vsel %vm447_vm0, %v1156_v23, %v632_v46 }
  0xa4   :  { %713 = vst.msk [vmem:[%s1475_s2 + $0x38] sm:$0xff] %vm464_vm1, %v676_v14  ;;  %v634_v13 = vpop.permute.xlu0 %633 }
  0xa5   :  { %v677_v52 = vsel %vm447_vm0, %v1178_v26, %v634_v13 }
  0xa6   :  { %v636_v45 = vpop.permute.xlu1 %635  ;;  %714 = vst.msk [vmem:[%s1475_s2 + $0x48] sm:$0xff] %vm464_vm1, %v677_v52 }
  0xa7   :  { %v678_v22 = vsel %vm447_vm0, %v1167_v3, %v636_v45 }
  0xa8   :  { %715 = vst.msk [vmem:[%s1475_s2 + $0x58] sm:$0xff] %vm464_vm1, %v678_v22  ;;  %v638_v23 = vpop.permute.xlu0 %637 }
  0xa9   :  { %v679_v49 = vsel %vm447_vm0, %v1190_v27, %v638_v23 }
  0xaa   :  { %v640_v53 = vpop.permute.xlu1 %639  ;;  %716 = vst.msk [vmem:[%s1475_s2 + $0x68] sm:$0xff] %vm464_vm1, %v679_v49 }
  0xab   :  { %v680_v26 = vsel %vm447_vm0, %v1181_v17, %v640_v53 }
  0xac   :  { %717 = vst.msk [vmem:[%s1475_s2 + $0x78] sm:$0xff] %vm464_vm1, %v680_v26  ;;  %v642_v3 = vpop.permute.xlu0 %641 }
  0xad   :  { %v681_v47 = vsel %vm447_vm0, %v1209_v21, %v642_v3 }
  0xae   :  { %v644_v51 = vpop.permute.xlu1 %643  ;;  %718 = vst.msk [vmem:[%s1475_s2 + $0x88] sm:$0xff] %vm464_vm1, %v681_v47 }
  0xaf   :  { %v682_v27 = vsel %vm447_vm0, %v1201_v10, %v644_v51 }
  0xb0   :  { %719 = vst.msk [vmem:[%s1475_s2 + $0x98] sm:$0xff] %vm464_vm1, %v682_v27  ;;  %v646_v17 = vpop.permute.xlu0 %645 }
  0xb1   :  { %v683_v54 = vsel %vm447_vm0, %v1225_v28, %v646_v17 }
  0xb2   :  { %v648_v50 = vpop.permute.xlu1 %647  ;;  %720 = vst.msk [vmem:[%s1475_s2 + $0xa8] sm:$0xff] %vm464_vm1, %v683_v54 }
  0xb3   :  { %v684_v21 = vsel %vm447_vm0, %v1218_v41, %v648_v50 }
  0xb4   :  { %721 = vst.msk [vmem:[%s1475_s2 + $0xb8] sm:$0xff] %vm464_vm1, %v684_v21  ;;  %v650_v10 = vpop.permute.xlu0 %649 }
  0xb5   :  { %v685_v56 = vsel %vm447_vm0, %v1243_v36, %v650_v10 }
  0xb6   :  { %v652_v57 = vpop.permute.xlu1 %651  ;;  %722 = vst.msk [vmem:[%s1475_s2 + $0xc8] sm:$0xff] %vm464_vm1, %v685_v56 }
  0xb7   :  { %v686_v28 = vsel %vm447_vm0, %v1235_v33, %v652_v57 }
  0xb8   :  { %723 = vst.msk [vmem:[%s1475_s2 + $0xd8] sm:$0xff] %vm464_vm1, %v686_v28  ;;  %v654_v41 = vpop.permute.xlu0 %653 }
  0xb9   :  { %v687_v58 = vsel %vm447_vm0, %v1261_v43, %v654_v41 }
  0xba   :  { %v656_v59 = vpop.permute.xlu1 %655  ;;  %724 = vst.msk [vmem:[%s1475_s2 + $0xe8] sm:$0xff] %vm464_vm1, %v687_v58 }
  0xbb   :  { %v688_v36 = vsel %vm447_vm0, %v1253_v40, %v656_v59 }
  0xbc   :  { %725 = vst.msk [vmem:[%s1475_s2 + $0xf8] sm:$0xff] %vm464_vm1, %v688_v36 }

</bundles_post_ra>
